<compile_context>
chip_gen: v6e
topology: v6e:2x2x1
jax: 0.10.0
libtpu: 0.0.40
codegen_flags: <defaults>
</compile_context>

<pallas_src>
import functools
import math

import jax
import jax.numpy as jnp
from jax.experimental import pallas as pl
from jax.experimental.pallas import tpu as pltpu


def _pooler_kernel(x_ref, w_ref, b_ref, o_ref, *, act_dtype):
    """One grid step: one (row tile, output-feature tile) of the pooled output.

    x_ref : (tb, H)   first-token activations (input dtype; cast to bf16 here)
    w_ref : (H, tn)   dense weight, (in, out) layout, bf16
    b_ref : (1, tn)   dense bias, f32
    o_ref : (tb, tn)  pooled output tile
    """
    # Cast fused with the load; MXU gets bf16 operands, accumulates in f32.
    x = x_ref[...].astype(jnp.bfloat16)
    acc = jnp.dot(x, w_ref[...], preferred_element_type=jnp.float32)
    # bias_tanh: tanh(bias + x @ W).  act_dtype = bf16 on v6e/v7x, f32 on v5e.
    z = (acc + b_ref[...]).astype(act_dtype)
    o_ref[...] = jnp.tanh(z).astype(o_ref.dtype)


def _round_up(n, m):
    return ((n + m - 1) // m) * m


def _device_kind():
    try:
        return jax.devices()[0].device_kind.lower()
    except Exception:  # pragma: no cover - e.g. interpret mode / no devices
        return ""


def medical_bert_pooler(hidden_states, params, *, block_rows=None,
                        block_cols=None, out_dtype=None):
    """hidden_states: (B, S, H). Returns pooled output (B, H).

    params["dense_weight"]: (H_in, H_out) -- transpose of PyTorch's (out, in),
    ideally pre-cast to bf16 once at load time.  params["dense_bias"]: (H,).
    """
    B, S, H = hidden_states.shape
    out_dtype = hidden_states.dtype if out_dtype is None else out_dtype

    w = params["dense_weight"]
    if w.dtype != jnp.bfloat16:
        # Prefer pre-casting at param-load time; this is a per-call fallback.
        w = w.astype(jnp.bfloat16)
    b = params["dense_bias"].reshape(1, H).astype(jnp.float32)

    kind = _device_kind()
    # v5e has no bf16 EUP path -> keep tanh in f32 there; bf16 elsewhere.
    act_dtype = jnp.float32 if "v5" in kind else jnp.bfloat16

    # --- row (batch) tiling: multiples of 16 for full bf16 sublane packing ---
    if block_rows is None:
        block_rows = 256 if H < 4096 else 128   # keep VMEM modest at huge H
    tb = _round_up(min(block_rows, _round_up(B, 16)), 16)
    ni = pl.cdiv(B, tb)

    # --- column (output-feature) tiling ---
    if block_cols is not None:
        tn = block_cols
    else:
        tn = H
        if H >= 2048:
            # Keep the resident weight tile small (v7x: 64 MiB VMEM, 32 MiB scoped).
            for cand in (512, 256, 128):
                if H % cand == 0:
                    tn = cand
                    break
        elif ("7" in kind) and ni == 1 and H % 256 == 0:
            # Small batch on v7x: split output features so both TensorCores work.
            tn = H // 2
    if H % tn != 0:
        tn = H
    nj = H // tn

    # --- fused first-token gather ---
    # Collapsing (B, S, H) -> (B, S*H) is metadata-only for row-major layout;
    # the x BlockSpec then DMAs only the first H lanes of each row (the first
    # token), so no x0 slice/cast/pad is ever written back to HBM.
    if H % 128 == 0:
        x_in = hidden_states.reshape(B, S * H)
    else:
        # Lane-alignment fallback: explicit first-token slice in the wrapper.
        x_in = hidden_states[:, 0, :]
    x_spec = pl.BlockSpec((tb, H), lambda j, i: (i, 0))

    in_itemsize = jnp.dtype(hidden_states.dtype).itemsize
    out_itemsize = jnp.dtype(out_dtype).itemsize
    cost = pl.CostEstimate(
        flops=2 * B * H * H,
        transcendentals=B * H,
        bytes_accessed=(B * H * in_itemsize + H * H * 2 + H * 4
                        + B * H * out_itemsize),
    )

    # Grid: (columns outer, rows inner) so the (H, tn) weight tile stays
    # resident across the inner row sweep; both axes are independent.
    out = pl.pallas_call(
        functools.partial(_pooler_kernel, act_dtype=act_dtype),
        out_shape=jax.ShapeDtypeStruct((B, H), out_dtype),
        grid=(nj, ni),
        in_specs=[
            x_spec,                                       # first-token rows
            pl.BlockSpec((H, tn), lambda j, i: (0, j)),   # weight column tile
            pl.BlockSpec((1, tn), lambda j, i: (0, j)),   # bias column tile
        ],
        out_specs=pl.BlockSpec((tb, tn), lambda j, i: (i, j)),
        compiler_params=pltpu.CompilerParams(
            dimension_semantics=("parallel", "parallel")),
        cost_estimate=cost,
    )(x_in, w, b)

    return out


def init_params(key, hidden_size):
    """Synthetic params matching LinearActivation(H, H, 'tanh').

    The weight is generated in PyTorch's (out, in) layout (kaiming_uniform with
    a=sqrt(5) == U(-1/sqrt(fan_in), 1/sqrt(fan_in))) and then stored transposed
    to (in, out) and pre-cast to bf16 -- do this once at checkpoint-load time so
    the kernel never transposes or casts the (H, H) weight per call.
    """
    k1, k2 = jax.random.split(key)
    bound = 1.0 / math.sqrt(hidden_size)
    w_pt = jax.random.uniform(k1, (hidden_size, hidden_size),
                              jnp.float32, -bound, bound)      # (out, in)
    return {
        "dense_weight": jnp.asarray(w_pt.T, dtype=jnp.bfloat16),  # (in, out)
        "dense_bias": jax.random.uniform(k2, (hidden_size,),
                                         jnp.float32, -bound, bound),
    }


def _reference(hidden_states, params):
    """Pure-JAX (f32) reference of the PyTorch forward."""
    x0 = hidden_states[:, 0, :].astype(jnp.float32)
    w = params["dense_weight"].astype(jnp.float32)   # (in, out)
    b = params["dense_bias"].astype(jnp.float32)
    return jnp.tanh(x0 @ w + b)


if __name__ == "__main__":
    B, S, H = 2, 8, 128
    key = jax.random.PRNGKey(0)
    kx, kp = jax.random.split(key)

    hidden_states = jax.random.normal(kx, (B, S, H), jnp.float32)
    params = init_params(kp, H)

    fn = jax.jit(medical_bert_pooler)
    pooled = fn(hidden_states, params)
    jax.block_until_ready(pooled)

    ref = _reference(hidden_states, params)
    assert pooled.shape == (B, H)
    max_err = float(jnp.max(jnp.abs(pooled.astype(jnp.float32) - ref)))
    # bf16 matmul operands / bf16 activation path -> relaxed tolerance vs f32 ref.
    assert jnp.allclose(pooled.astype(jnp.float32), ref, atol=2e-2, rtol=2e-2), max_err

    print("KERNEL_OK")
</pallas_src>

<mosaic_0001>
module attributes {stable_mosaic.version = 11 : i64} {
  func.func @_pooler_kernel(%arg0: i32, %arg1: i32, %arg2: memref<16x128xf32, #tpu.memory_space<vmem>>, %arg3: memref<128x128xbf16, #tpu.memory_space<vmem>>, %arg4: memref<1x128xf32, #tpu.memory_space<vmem>>, %arg5: memref<16x128xf32, #tpu.memory_space<vmem>>) attributes {dimension_semantics = [#tpu.dimension_semantics<parallel>, #tpu.dimension_semantics<parallel>], iteration_bounds = array<i64: 1, 1>, scalar_prefetch = 0 : i64, scratch_operands = 0 : i64, tpu.core_type = #tpu.core_type<tc>, window_params = [{transform_indices = @transform_0, window_bounds = array<i64: 16, 128>}, {transform_indices = @transform_1, window_bounds = array<i64: 128, 128>}, {transform_indices = @transform_2, window_bounds = array<i64: 1, 128>}, {transform_indices = @transform_3, window_bounds = array<i64: 16, 128>}]} {
    %c0 = arith.constant 0 : index
    %c0_0 = arith.constant 0 : index
    %0 = vector.load %arg2[%c0, %c0_0] : memref<16x128xf32, #tpu.memory_space<vmem>>, vector<16x128xf32>
    %1 = arith.truncf %0 : vector<16x128xf32> to vector<16x128xbf16>
    %c0_1 = arith.constant 0 : index
    %c0_2 = arith.constant 0 : index
    %2 = vector.load %arg3[%c0_1, %c0_2] : memref<128x128xbf16, #tpu.memory_space<vmem>>, vector<128x128xbf16>
    %cst = arith.constant dense<0.000000e+00> : vector<16x128xf32>
    %3 = tpu.matmul %1, %2, %cst {dimension_numbers = #tpu.dot_dimension_numbers<[1], [0], [0], [1], [0, 0, 1, 1], [], []>} : vector<16x128xbf16>, vector<128x128xbf16>, vector<16x128xf32> -> vector<16x128xf32>
    %c0_3 = arith.constant 0 : index
    %c0_4 = arith.constant 0 : index
    %4 = vector.load %arg4[%c0_3, %c0_4] : memref<1x128xf32, #tpu.memory_space<vmem>>, vector<1x128xf32>
    %5 = vector.broadcast %4 : vector<1x128xf32> to vector<16x128xf32>
    %6 = arith.addf %3, %5 : vector<16x128xf32>
    %7 = arith.truncf %6 : vector<16x128xf32> to vector<16x128xbf16>
    %8 = math.tanh %7 : vector<16x128xbf16>
    %9 = arith.extf %8 : vector<16x128xbf16> to vector<16x128xf32>
    %c0_5 = arith.constant 0 : index
    %c0_6 = arith.constant 0 : index
    %10 = vector.load %arg5[%c0_5, %c0_6] : memref<16x128xf32, #tpu.memory_space<vmem>>, vector<16x128xf32>
    tpu.vector_store %arg5[%c0_5, %c0_6], %9 {strides = array<i32>} : memref<16x128xf32, #tpu.memory_space<vmem>>, vector<16x128xf32>,
    return
  }
  func.func @transform_0(%arg0: i32, %arg1: i32) -> (i32, i32) {
    %c0_i32 = arith.constant 0 : i32
    %c0_i32_0 = arith.constant 0 : i32
    return %arg1, %c0_i32 : i32, i32
  }
  func.func @transform_1(%arg0: i32, %arg1: i32) -> (i32, i32) {
    %c0_i32 = arith.constant 0 : i32
    %c0_i32_0 = arith.constant 0 : i32
    return %c0_i32, %arg0 : i32, i32
  }
  func.func @transform_2(%arg0: i32, %arg1: i32) -> (i32, i32) {
    %c0_i32 = arith.constant 0 : i32
    %c0_i32_0 = arith.constant 0 : i32
    return %c0_i32, %arg0 : i32, i32
  }
  func.func @transform_3(%arg0: i32, %arg1: i32) -> (i32, i32) {
    %c0_i32 = arith.constant 0 : i32
    return %arg1, %arg0 : i32, i32
  }
}

</mosaic_0001>

<bundles_post_ra>
// kernel: medical_bert_pooler.1
= control target key start
LH: loop header
LB: loop body
LE: loop exit
PB: predicated region body
PF: predicated region fallthrough
CT: control target
= control target key end

     0   :  { %8 = vsyncpa [#allocation4], 0  ;;  %s347_s0 = inlined_call_operand.vmem [shape: f32[2,1024], index: 0, kind: input, shape index: {}]   ;;  %s348_s1 = inlined_call_operand.hbm [shape: bf16[128,128], index: 1, kind: input, shape index: {}]   ;;  %s349_s2 = inlined_call_operand.vmem [shape: f32[1,128], index: 2, kind: input, shape index: {}]   ;;  %s350_s3 = inlined_call_operand.hbm [shape: f32[2,128], index: 3, kind: output, shape index: {}]  }
   0x1   :  { %9 = vsyncpa [#allocation5], 0  ;;  %v28_v0 = vld [vmem:[%s347_s0] sm:$0x3]  ;;  %s307_s14 = smov [#allocation3]  }
   0x2   :  { %29 = vst [vmem:[#allocation2] sm:$0x3] %v28_v0  ;;  %s50_s15 = sshll.u32 %s307_s14, 4  ;;  %s51_s15 = int_to_ptr.vmem [resolvable:$true] %s50_s15 }
   0x3   :  { %s271_s16 = scalar_lea.vmem %s51_s15, 1024  ;;  %p276_p1 = scmp.lt.s32.totalorder %s51_s15, %s51_s15 }
   0x4   :  { %p272_p0 = scmp.ne.s32.totalorder %s51_s15, %s271_s16  ;;  %p277_p2 = scmp.lt.s32.totalorder %s271_s16, %s271_s16 }
   0x6   :  { %p278_p3 = por %p277_p2, %p276_p1 }
   0x8   :  { %p279_p4 = pnand %p278_p3, %p272_p0 }
   0xa   :  { %282 = shalt.err (!%p279_p4)
}
   0xb   :  { %s308_s17 = smov 64   ;;  %s309_s18 = smov 4  }
   0xc   :  { %56 = dma.hbm_to_vmem [thread:$0]  %s348_s1, 1024, %s51_s15, [#allocation4], %s308_s17, %s308_s17, %s309_s18  }
   0xd   :  { %303 = dma.done.wait [#allocation4], 1024  }
   0xe   :  { %304 = vsyncadd [#allocation4], 4294966272  ;;  %v310_v1 = vmov 0.0   ;;  %vm311_vm0 = vmmov 0   ;;  %v253_v2 = vld [vmem:[#allocation3 + $0x38] sm:$0xff]   ;;  %v254_v3 = vld [vmem:[#allocation3 + $0x30] sm:$0xff]  }
   0xf   :  { %225 = vmatprep.subr.bf16.mxu0 %v310_v1  ;;  %241 = vmatprep.mubr.msk.bf16.mxu0 %vm311_vm0, %v310_v1  ;;  %v255_v4 = vld [vmem:[#allocation3 + $0x28] sm:$0xff]   ;;  %v256_v5 = vld [vmem:[#allocation3 + $0x20] sm:$0xff]   ;;  %v257_v6 = vld [vmem:[#allocation3 + $0x18] sm:$0xff]  }
  0x10   :  { %226 = vmatpush3.bf16.msra.mxu0 %v253_v2  ;;  %v258_v7 = vld [vmem:[#allocation3 + $0x10] sm:$0xff]   ;;  %v259_v8 = vld [vmem:[#allocation3 + $0x8] sm:$0xff]   ;;  %v260_v9 = vld [vmem:[#allocation3] sm:$0xff]  }
  0x11   :  { %227 = vmatprep.subr.bf16.mxu0 %v310_v1  ;;  %v65_v10 = vld [vmem:[#allocation2] sm:$0xff]  ;;  %v66_v11 = vld [vmem:[#allocation2 + $0x8] sm:$0xff] }
  0x12   :  { %v67_v12 = vpack.c.bf16 %v66_v11, %v65_v10  ;;  %v207_v14 = vld [vmem:[%s349_s2] ss:$0 sm:$0xff] }
  0x14   :  { %228 = vmatpush3.bf16.msra.mxu0 %v254_v3 }
  0x15   :  { %229 = vmatprep.subr.bf16.mxu0 %v310_v1 }
  0x18   :  { %230 = vmatpush3.bf16.msra.mxu0 %v255_v4 }
  0x19   :  { %231 = vmatprep.subr.bf16.mxu0 %v310_v1 }
  0x1c   :  { %232 = vmatpush3.bf16.msra.mxu0 %v256_v5 }
  0x1d   :  { %233 = vmatprep.subr.bf16.mxu0 %v310_v1 }
  0x20   :  { %234 = vmatpush3.bf16.msra.mxu0 %v257_v6 }
  0x21   :  { %235 = vmatprep.subr.bf16.mxu0 %v310_v1 }
  0x24   :  { %236 = vmatpush3.bf16.msra.mxu0 %v258_v7 }
  0x25   :  { %237 = vmatprep.subr.bf16.mxu0 %v310_v1 }
  0x28   :  { %238 = vmatpush3.bf16.msra.mxu0 %v259_v8 }
  0x29   :  { %239 = vmatprep.subr.bf16.mxu0 %v310_v1 }
  0x2c   :  { %240 = vmatpush3.bf16.msra.mxu0 %v260_v9 }
  0x2f   :  { %242 = vmatmul.mubr.bf16.vlgmr.msra.gmra.mxu0 %v67_v12 }
  0xef   :  { %v173_v13 = vpop.f32.mrf.mxu0 }
  0xf0   :  { %v174_v17 = vadd.f32 %v207_v14, %v173_v13 }
  0xf1   :  { %v243_v15 = vpop.f32.mrf.mxu0 }
  0xf3   :  { %v176_v16 = vpop.f32.mrf.mxu0 }
  0xf4   :  { %v177_v18 = vadd.f32 %v207_v14, %v176_v16 }
  0xf5   :  { %v244_v19 = vpop.f32.mrf.mxu0 }
  0xf6   :  { %v180_v20 = vpack.c.bf16 %v177_v18, %v174_v17 }
  0xf8   :  { %261 = vtanh.bf16 %v180_v20 }
 0x106   :  { %v262_v21 = vpop.eup %261 }
 0x107   :  { %v182_v22 = vunpack.c.l.bf16 %v262_v21  ;;  %v183_v23 = vunpack.c.h.bf16 %v262_v21 }
 0x109   :  { %184 = vst [vmem:[#allocation6] sm:$0xff] %v182_v22  ;;  %185 = vst [vmem:[#allocation6 + $0x8] sm:$0xff] %v183_v23 }
 0x10a   :  { %190 = vsyncadd [#allocation5], 224  ;;  %s312_s21 = smov [#allocation6]  }
 0x10b   :  { %s191_s22 = sshll.u32 %s312_s21, 4  ;;  %s192_s22 = int_to_ptr.vmem [resolvable:$true] %s191_s22 }
 0x10c   :  { %s283_s23 = scalar_lea.vmem %s192_s22, 32  ;;  %s287_s24 = scalar_lea.vmem %s192_s22, 256 }
 0x10d   :  { %p284_p5 = scmp.ne.s32.totalorder %s192_s22, %s283_s23  ;;  %p288_p6 = scmp.lt.s32.totalorder %s192_s22, %s192_s22 }
 0x10e   :  { %p289_p7 = scmp.lt.s32.totalorder %s287_s24, %s283_s23 }
 0x110   :  { %p290_p8 = por %p289_p7, %p288_p6 }
 0x112   :  { %p291_p9 = pnand %p290_p8, %p284_p5 }
 0x114   :  { %294 = shalt.err (!%p291_p9)
}
 0x115   :  { %s313_s2 = smov 32   ;;  %s314_s25 = smov 2  }
 0x116   :  { %197 = dma.vmem_to_hbm [thread:$0]  %s192_s22, 32, %s350_s3, [#allocation5], %s313_s2, %s313_s2, %s314_s25  }
 0x117   :  { %305 = dma.done.wait [#allocation5], 256  }
 0x118   :  { %306 = vsyncadd [#allocation5], 4294967040 }
 0x119   :  { %201 = vsyncpa [#allocation4], 1 }
 0x11a   :  { %202 = vsyncpa [#allocation5], 1 }

</bundles_post_ra>
